<compile_context>
chip_gen: v5e
topology: v5e:2x2
jax: 0.10.0
libtpu: 0.0.40
codegen_flags: <defaults>
</compile_context>

<pallas_src>
import functools

import jax
import jax.numpy as jnp
from jax.experimental import pallas as pl
from jax.experimental.pallas import tpu as pltpu


def _round_up(x, m):
    return -(-x // m) * m


def _pick_tile(total, unit, cap):
    """Largest multiple of `unit` that divides `total` and is <= max(cap, unit)."""
    cap = max(cap, unit)
    best = unit
    m = unit
    while m <= min(total, cap):
        if total % m == 0:
            best = m
        m += unit
    return best


def _longconv_kernel(cur_ref, halo_ref, w_ref, b_ref, o_ref, slab_ref, *,
                     tile_rows, halo, ksize, chunk):
    # cur_ref : (1, TL, C)    current time tile (input dtype)
    # halo_ref: (1, HALO, C)  last HALO rows of the previous time tile
    # w_ref   : (K, C)        per-channel taps (tap k multiplies x[t-(K-1)+k])
    # b_ref   : (1, C)        bias
    # o_ref   : (1, TL, C)
    # slab_ref: (HALO+TL, C)  VMEM staging slab: row r == x[tile_start - HALO + r]
    j = pl.program_id(1)
    cf = o_ref.shape[-1]

    # Causal left-pad lives only in VMEM: the first tile zeroes the halo region.
    @pl.when(j == 0)
    def _():
        slab_ref[0:halo, :] = jnp.zeros((halo, cf), slab_ref.dtype)

    @pl.when(j > 0)
    def _():
        slab_ref[0:halo, :] = halo_ref[0, :, :]

    slab_ref[halo:halo + tile_rows, :] = cur_ref[0, :, :]

    # Hoisted once per tile: taps and bias in f32 (no re-broadcast per chunk).
    w_f32 = w_ref[...].astype(jnp.float32)                               # (K, C)
    bias_tile = jnp.broadcast_to(b_ref[...].astype(jnp.float32), (chunk, cf))

    n_chunks = tile_rows // chunk

    @pl.loop(0, n_chunks)
    def _(ci):
        row0 = pl.multiple_of(ci * chunk, 8)
        # One aligned VMEM load per chunk; per-tap windows are register shifts.
        ext = slab_ref[pl.ds(row0, chunk + halo), :]                     # (chunk+halo, C)
        acc = bias_tile                                                  # bias-initialized
        for k in range(ksize):                                           # static unroll
            s = ksize - 1 - k                                            # time shift of tap k
            win = ext[halo - s:halo - s + chunk, :]                      # x[t - s]
            acc = acc + win.astype(jnp.float32) * w_f32[k:k + 1, :]
        o_ref[0, pl.ds(row0, chunk), :] = acc.astype(o_ref.dtype)


def longconv_forward(x_ncl, weight, bias, kernel_size, time_tile=None):
    """x_ncl: (B, C, L); weight: (C, 1, K); bias: (C,). Returns (B, C, L)."""
    B, C, L = x_ncl.shape
    K = int(kernel_size)
    dtype = x_ncl.dtype

    # Lane density: fold G batch elements into the channel axis when C < 128.
    if C < 128 and 128 % C == 0 and B % (128 // C) == 0:
        G = 128 // C
    else:
        G = 1
    Bf, Cf = B // G, G * C

    # (B, C, L) -> (Bf, L, Cf): layout glue only (module interface is NCL).
    x_f = jnp.transpose(x_ncl.reshape(Bf, G, C, L), (0, 3, 1, 2)).reshape(Bf, L, Cf)
    w_f = jnp.tile(jnp.transpose(weight[:, 0, :], (1, 0)), (1, G))       # (K, Cf)
    b_f = jnp.tile(bias.reshape(1, C), (1, G))                           # (1, Cf)

    # Halo = rows of the previous tile needed for causality, sublane-aligned.
    HALO = max(8, _round_up(K - 1, 8))
    # TODO(synk): L not divisible by the 8-row halo would need a ragged last tile;
    # not required for this module's shapes.
    assert L % HALO == 0, "L must be a multiple of the (8-aligned) halo size"

    target = 512 if time_tile is None else int(time_tile)
    TL = _pick_tile(L, HALO, target)            # time-tile rows (multiple of HALO)
    n_tiles = L // TL
    cap_rows = max(8, (16384 // Cf) // 8 * 8)   # keep f32 accumulator <= ~64 KiB
    CH = _pick_tile(TL, 8, cap_rows)            # chunk rows inside a tile
    halo_blocks = TL // HALO

    kernel = functools.partial(_longconv_kernel, tile_rows=TL, halo=HALO,
                               ksize=K, chunk=CH)

    out = pl.pallas_call(
        kernel,
        out_shape=jax.ShapeDtypeStruct((Bf, L, Cf), dtype),
        grid_spec=pltpu.PrefetchScalarGridSpec(
            num_scalar_prefetch=0,
            grid=(Bf, n_tiles),
            in_specs=[
                # current time tile
                pl.BlockSpec((1, TL, Cf), lambda b, j: (b, j, 0)),
                # overlapping halo: last HALO rows of the previous tile (clamped;
                # contents unused for j == 0, which zeroes the halo in-kernel)
                pl.BlockSpec((1, HALO, Cf),
                             lambda b, j: (b, jnp.maximum(j * halo_blocks - 1, 0), 0)),
                pl.BlockSpec((K, Cf), lambda b, j: (0, 0)),
                pl.BlockSpec((1, Cf), lambda b, j: (0, 0)),
            ],
            out_specs=pl.BlockSpec((1, TL, Cf), lambda b, j: (b, j, 0)),
            scratch_shapes=[pltpu.VMEM((HALO + TL, Cf), dtype)],
        ),
        compiler_params=pltpu.CompilerParams(
            dimension_semantics=("parallel", "parallel"),
            vmem_limit_bytes=32 * 1024 * 1024,
        ),
    )(x_f, x_f, w_f, b_f)

    # Unfold back to the module's NCL layout.
    return jnp.transpose(out.reshape(Bf, L, G, C), (0, 2, 3, 1)).reshape(B, C, L)


def longconv_reference(x_ncl, weight, bias, kernel_size):
    """Pure-JAX reference with identical semantics (causal depthwise conv)."""
    B, C, L = x_ncl.shape
    K = kernel_size
    x_pad = jnp.pad(x_ncl, ((0, 0), (0, 0), (K - 1, 0)))                 # (B, C, L+K-1)
    y = jnp.zeros((B, C, L), dtype=jnp.float32)
    for k in range(K):
        y = y + x_pad[:, :, k:k + L].astype(jnp.float32) * weight[:, 0, k][None, :, None]
    return (y + bias[None, :, None]).astype(x_ncl.dtype)


if __name__ == "__main__":
    key = jax.random.PRNGKey(0)
    configs = [
        # (B, C, L, K, time_tile)
        (2, 64, 16, 8, 8),      # folds batch -> 128 lanes, 2 time tiles (halo path)
        (2, 64, 16, 8, None),   # single time tile
        (1, 256, 32, 6, 8),     # no fold, 4 time tiles, non-pow2 kernel size
    ]
    for i, (B, C, L, K, tt) in enumerate(configs):
        kx, kw, kb, key = jax.random.split(jax.random.fold_in(key, i), 4)
        x = jax.random.normal(kx, (B, C, L), dtype=jnp.float32)
        bound = 1.0 / (K ** 0.5)     # mirrors nn.Conv1d init bound (fan_in = 1*K)
        weight = jax.random.uniform(kw, (C, 1, K), minval=-bound, maxval=bound,
                                    dtype=jnp.float32)
        bias = jax.random.uniform(kb, (C,), minval=-bound, maxval=bound,
                                  dtype=jnp.float32)

        y = jax.block_until_ready(longconv_forward(x, weight, bias, K, time_tile=tt))
        y_ref = longconv_reference(x, weight, bias, K)
        assert y.shape == (B, C, L)
        assert jnp.allclose(y, y_ref, atol=1e-5, rtol=1e-5), f"mismatch vs reference (config {i})"

    print("KERNEL_OK")
</pallas_src>

<mosaic_0001>
module attributes {stable_mosaic.version = 11 : i64} {
  func.func @_longconv_kernel(%arg0: i32, %arg1: i32, %arg2: memref<1x8x128xf32, #tpu.memory_space<vmem>>, %arg3: memref<1x8x128xf32, #tpu.memory_space<vmem>>, %arg4: memref<8x128xf32, #tpu.memory_space<vmem>>, %arg5: memref<1x128xf32, #tpu.memory_space<vmem>>, %arg6: memref<1x8x128xf32, #tpu.memory_space<vmem>>, %arg7: memref<16x128xf32, #tpu.memory_space<vmem>>) attributes {dimension_semantics = [#tpu.dimension_semantics<parallel>, #tpu.dimension_semantics<parallel>], iteration_bounds = array<i64: 1, 2>, scalar_prefetch = 0 : i64, scratch_operands = 1 : i64, tpu.core_type = #tpu.core_type<tc>, window_params = [{transform_indices = @transform_0, window_bounds = array<i64: 1, 8, 128>}, {transform_indices = @transform_1, window_bounds = array<i64: 1, 8, 128>}, {pipeline_mode = #tpu.pipeline_mode<synchronous>, transform_indices = @transform_2, window_bounds = array<i64: 8, 128>}, {pipeline_mode = #tpu.pipeline_mode<synchronous>, transform_indices = @transform_3, window_bounds = array<i64: 1, 128>}, {transform_indices = @transform_4, window_bounds = array<i64: 1, 8, 128>}]} {
    %c0_i32 = arith.constant 0 : i32
    %0 = arith.cmpi eq, %arg1, %c0_i32 : i32
    %1 = arith.extui %0 : i1 to i32
    %c0_i32_0 = arith.constant 0 : i32
    %2 = arith.cmpi ne, %1, %c0_i32_0 : i32
    scf.if %2 {
      %cst = arith.constant 0.000000e+00 : f32
      %63 = vector.broadcast %cst : f32 to vector<8x128xf32>
      %c0_16 = arith.constant 0 : index
      %c0_17 = arith.constant 0 : index
      %64 = vector.load %arg7[%c0_16, %c0_17] : memref<16x128xf32, #tpu.memory_space<vmem>>, vector<8x128xf32>
      tpu.vector_store %arg7[%c0_16, %c0_17], %63 {strides = array<i32>} : memref<16x128xf32, #tpu.memory_space<vmem>>, vector<8x128xf32>,
    } else {
    }
    %c0_i32_1 = arith.constant 0 : i32
    %3 = arith.cmpi sgt, %arg1, %c0_i32_1 : i32
    %4 = arith.extui %3 : i1 to i32
    %c0_i32_2 = arith.constant 0 : i32
    %5 = arith.cmpi ne, %4, %c0_i32_2 : i32
    scf.if %5 {
      %c0_16 = arith.constant 0 : index
      %c0_17 = arith.constant 0 : index
      %c0_18 = arith.constant 0 : index
      %63 = vector.load %arg3[%c0_16, %c0_17, %c0_18] : memref<1x8x128xf32, #tpu.memory_space<vmem>>, vector<1x8x128xf32>
      %64 = vector.shape_cast %63 : vector<1x8x128xf32> to vector<8x128xf32>
      %c0_19 = arith.constant 0 : index
      %c0_20 = arith.constant 0 : index
      %65 = vector.load %arg7[%c0_19, %c0_20] : memref<16x128xf32, #tpu.memory_space<vmem>>, vector<8x128xf32>
      tpu.vector_store %arg7[%c0_19, %c0_20], %64 {strides = array<i32>} : memref<16x128xf32, #tpu.memory_space<vmem>>, vector<8x128xf32>,
    } else {
    }
    %c0 = arith.constant 0 : index
    %c0_3 = arith.constant 0 : index
    %c0_4 = arith.constant 0 : index
    %6 = vector.load %arg2[%c0, %c0_3, %c0_4] : memref<1x8x128xf32, #tpu.memory_space<vmem>>, vector<1x8x128xf32>
    %7 = vector.shape_cast %6 : vector<1x8x128xf32> to vector<8x128xf32>
    %c8 = arith.constant 8 : index
    %c0_5 = arith.constant 0 : index
    %8 = vector.load %arg7[%c8, %c0_5] : memref<16x128xf32, #tpu.memory_space<vmem>>, vector<8x128xf32>
    tpu.vector_store %arg7[%c8, %c0_5], %7 {strides = array<i32>} : memref<16x128xf32, #tpu.memory_space<vmem>>, vector<8x128xf32>,
    %c0_6 = arith.constant 0 : index
    %c0_7 = arith.constant 0 : index
    %9 = vector.load %arg4[%c0_6, %c0_7] : memref<8x128xf32, #tpu.memory_space<vmem>>, vector<8x128xf32>
    %c0_8 = arith.constant 0 : index
    %c0_9 = arith.constant 0 : index
    %10 = vector.load %arg5[%c0_8, %c0_9] : memref<1x128xf32, #tpu.memory_space<vmem>>, vector<1x128xf32>
    %11 = vector.shape_cast %10 : vector<1x128xf32> to vector<1x128xf32>
    %12 = vector.broadcast %11 : vector<1x128xf32> to vector<8x128xf32>
    %c0_i32_10 = arith.constant 0 : i32
    %c1_i32 = arith.constant 1 : i32
    %13 = arith.muli %c0_i32_10, %c1_i32 : i32
    %c0_i32_11 = arith.constant 0 : i32
    %14 = arith.addi %c0_i32_11, %13 : i32
    %c8_i32 = arith.constant 8 : i32
    %15 = arith.muli %14, %c8_i32 : i32
    %16 = tpu.assume_multiple %15, 8 : i32
    %17 = arith.index_cast %16 : i32 to index
    %c0_12 = arith.constant 0 : index
    %18 = vector.load %arg7[%17, %c0_12] : memref<16x128xf32, #tpu.memory_space<vmem>>, vector<16x128xf32>
    %19 = vector.extract_strided_slice %18 {offsets = [1, 0], sizes = [8, 128], strides = [1, 1]} : vector<16x128xf32> to vector<8x128xf32>
    %20 = vector.extract_strided_slice %9 {offsets = [0, 0], sizes = [1, 128], strides = [1, 1]} : vector<8x128xf32> to vector<1x128xf32>
    %21 = vector.broadcast %20 : vector<1x128xf32> to vector<8x128xf32>
    %22 = arith.mulf %19, %21 : vector<8x128xf32>
    %23 = arith.addf %12, %22 : vector<8x128xf32>
    %24 = vector.extract_strided_slice %18 {offsets = [2, 0], sizes = [8, 128], strides = [1, 1]} : vector<16x128xf32> to vector<8x128xf32>
    %25 = vector.extract_strided_slice %9 {offsets = [1, 0], sizes = [1, 128], strides = [1, 1]} : vector<8x128xf32> to vector<1x128xf32>
    %26 = vector.broadcast %25 : vector<1x128xf32> to vector<8x128xf32>
    %27 = arith.mulf %24, %26 : vector<8x128xf32>
    %28 = arith.addf %23, %27 : vector<8x128xf32>
    %29 = vector.extract_strided_slice %18 {offsets = [3, 0], sizes = [8, 128], strides = [1, 1]} : vector<16x128xf32> to vector<8x128xf32>
    %30 = vector.extract_strided_slice %9 {offsets = [2, 0], sizes = [1, 128], strides = [1, 1]} : vector<8x128xf32> to vector<1x128xf32>
    %31 = vector.broadcast %30 : vector<1x128xf32> to vector<8x128xf32>
    %32 = arith.mulf %29, %31 : vector<8x128xf32>
    %33 = arith.addf %28, %32 : vector<8x128xf32>
    %34 = vector.extract_strided_slice %18 {offsets = [4, 0], sizes = [8, 128], strides = [1, 1]} : vector<16x128xf32> to vector<8x128xf32>
    %35 = vector.extract_strided_slice %9 {offsets = [3, 0], sizes = [1, 128], strides = [1, 1]} : vector<8x128xf32> to vector<1x128xf32>
    %36 = vector.broadcast %35 : vector<1x128xf32> to vector<8x128xf32>
    %37 = arith.mulf %34, %36 : vector<8x128xf32>
    %38 = arith.addf %33, %37 : vector<8x128xf32>
    %39 = vector.extract_strided_slice %18 {offsets = [5, 0], sizes = [8, 128], strides = [1, 1]} : vector<16x128xf32> to vector<8x128xf32>
    %40 = vector.extract_strided_slice %9 {offsets = [4, 0], sizes = [1, 128], strides = [1, 1]} : vector<8x128xf32> to vector<1x128xf32>
    %41 = vector.broadcast %40 : vector<1x128xf32> to vector<8x128xf32>
    %42 = arith.mulf %39, %41 : vector<8x128xf32>
    %43 = arith.addf %38, %42 : vector<8x128xf32>
    %44 = vector.extract_strided_slice %18 {offsets = [6, 0], sizes = [8, 128], strides = [1, 1]} : vector<16x128xf32> to vector<8x128xf32>
    %45 = vector.extract_strided_slice %9 {offsets = [5, 0], sizes = [1, 128], strides = [1, 1]} : vector<8x128xf32> to vector<1x128xf32>
    %46 = vector.broadcast %45 : vector<1x128xf32> to vector<8x128xf32>
    %47 = arith.mulf %44, %46 : vector<8x128xf32>
    %48 = arith.addf %43, %47 : vector<8x128xf32>
    %49 = vector.extract_strided_slice %18 {offsets = [7, 0], sizes = [8, 128], strides = [1, 1]} : vector<16x128xf32> to vector<8x128xf32>
    %50 = vector.extract_strided_slice %9 {offsets = [6, 0], sizes = [1, 128], strides = [1, 1]} : vector<8x128xf32> to vector<1x128xf32>
    %51 = vector.broadcast %50 : vector<1x128xf32> to vector<8x128xf32>
    %52 = arith.mulf %49, %51 : vector<8x128xf32>
    %53 = arith.addf %48, %52 : vector<8x128xf32>
    %54 = vector.extract_strided_slice %18 {offsets = [8, 0], sizes = [8, 128], strides = [1, 1]} : vector<16x128xf32> to vector<8x128xf32>
    %55 = vector.extract_strided_slice %9 {offsets = [7, 0], sizes = [1, 128], strides = [1, 1]} : vector<8x128xf32> to vector<1x128xf32>
    %56 = vector.broadcast %55 : vector<1x128xf32> to vector<8x128xf32>
    %57 = arith.mulf %54, %56 : vector<8x128xf32>
    %58 = arith.addf %53, %57 : vector<8x128xf32>
    %c0_13 = arith.constant 0 : index
    %59 = arith.index_cast %16 : i32 to index
    %c0_14 = arith.constant 0 : index
    %60 = vector.load %arg6[%c0_13, %59, %c0_14] : memref<1x8x128xf32, #tpu.memory_space<vmem>>, vector<1x8x128xf32>
    %61 = vector.shape_cast %60 : vector<1x8x128xf32> to vector<8x128xf32>
    %62 = vector.shape_cast %58 : vector<8x128xf32> to vector<1x8x128xf32>
    tpu.vector_store %arg6[%c0_13, %59, %c0_14], %62 {strides = array<i32>} : memref<1x8x128xf32, #tpu.memory_space<vmem>>, vector<1x8x128xf32>,
    %c1_i32_15 = arith.constant 1 : i32
    return
  }
  func.func @transform_0(%arg0: i32, %arg1: i32) -> (i32, i32, i32) {
    %c0_i32 = arith.constant 0 : i32
    %c0_i32_0 = arith.constant 0 : i32
    return %arg0, %arg1, %c0_i32 : i32, i32, i32
  }
  func.func @transform_1(%arg0: i32, %arg1: i32) -> (i32, i32, i32) {
    %c1_i32 = arith.constant 1 : i32
    %0 = arith.muli %arg1, %c1_i32 : i32
    %c1_i32_0 = arith.constant 1 : i32
    %1 = arith.subi %0, %c1_i32_0 : i32
    %c0_i32 = arith.constant 0 : i32
    %2 = arith.maxsi %1, %c0_i32 : i32
    %c0_i32_1 = arith.constant 0 : i32
    %c0_i32_2 = arith.constant 0 : i32
    return %arg0, %2, %c0_i32_1 : i32, i32, i32
  }
  func.func @transform_2(%arg0: i32, %arg1: i32) -> (i32, i32) {
    %c0_i32 = arith.constant 0 : i32
    %c0_i32_0 = arith.constant 0 : i32
    %c0_i32_1 = arith.constant 0 : i32
    return %c0_i32, %c0_i32_0 : i32, i32
  }
  func.func @transform_3(%arg0: i32, %arg1: i32) -> (i32, i32) {
    %c0_i32 = arith.constant 0 : i32
    %c0_i32_0 = arith.constant 0 : i32
    %c0_i32_1 = arith.constant 0 : i32
    return %c0_i32, %c0_i32_0 : i32, i32
  }
  func.func @transform_4(%arg0: i32, %arg1: i32) -> (i32, i32, i32) {
    %c0_i32 = arith.constant 0 : i32
    %c0_i32_0 = arith.constant 0 : i32
    return %arg0, %arg1, %c0_i32 : i32, i32, i32
  }
}

</mosaic_0001>

<bundles_post_ra>
// kernel: tpu_custom_call.1
= control target key start
LH: loop header
LB: loop body
LE: loop exit
PB: predicated region body
PF: predicated region fallthrough
CT: control target
= control target key end

     0   :  { %s1105_s0 = inlined_call_operand.hbm [shape: f32[1,16,128], index: 0, kind: input, shape index: {}]   ;;  %s1106_s1 = inlined_call_operand.hbm [shape: f32[1,16,128], index: 1, kind: input, shape index: {}]   ;;  %s1107_s2 = inlined_call_operand.hbm [shape: f32[8,128], index: 2, kind: input, shape index: {}]   ;;  %s1108_s3 = inlined_call_operand.vmem [shape: f32[1,128], index: 3, kind: input, shape index: {}]   ;;  %s1109_s4 = inlined_call_operand.hbm [shape: f32[1,16,128], index: 4, kind: output, shape index: {}]  }
   0x1   :  { %1113 = sst [smem:[#allocation16_spill]] %s1107_s2 }
   0x2   :  { %9 = vsyncpa [#allocation4], 0 }
   0x3   :  { %11 = vsyncpa [#allocation4 + $0x1], 0 }
   0x4   :  { %12 = vsyncpa [#allocation7], 0 }
   0x5   :  { %14 = vsyncpa [#allocation7 + $0x1], 0 }
   0x6   :  { %15 = vsyncpa [#allocation5], 0 }
   0x7   :  { %17 = vsyncpa [#allocation5 + $0x1], 0  ;;  %s906_s15 = smov 0   ;;  %s908_s16 = smov 0  }
   0x8   :  { %s910_s17 = smov 0   ;;  %s912_s18 = smov 0  }
   0x9   :  { %s914_s19 = smov 0   ;;  %s916_s20 = smov 0  }
   0xa   :  { %s918_s21 = smov 0   ;;  %s920_s22 = smov 0  }
   0xb LB: > { %1114 = sst [smem:[#allocation14_spill]] %s872_s21  ;;  %s945_s23 = sadd.s32 4294967295, %s876_s22   ;;  %s876_s22 = sphi %s920_s22, %s23_s22   ;;  %s872_s21 = sphi %s918_s21, %s1127_s21   ;;  %s868_s20 = sphi %s916_s20, %s1126_s20   ;;  %s864_s19 = sphi %s914_s19, %s1131_s19   ;;  %s860_s18 = sphi %s912_s18, %s1130_s18   ;;  %s856_s17 = sphi %s910_s17, %s1129_s17   ;;  %s852_s16 = sphi %s908_s16, %s1086_s16   ;;  %s848_s15 = sphi %s906_s15, %s1128_s15  }
   0xc   : > { %p91_p0 = scmp.ne.s32.totalorder %s852_s16, %s848_s15  ;;  %p1112_p1 = scmp.eq.s32.totalorder %s945_s23, 0 }
   0xd   : > { %p159_p2 = scmp.eq.s32.totalorder %s945_s23, 1  ;;  %p552_p3 = scmp.ge.s32.totalorder %s876_s22, 1 }
   0xe   : > { %p172_p4 = scmp.lt.s32.totalorder %s876_s22, 3  ;;  %p954_p5 = por %p91_p0, %p1112_p1 }
   0xf   : > { %s1117_s2 = sld [smem:[#allocation16_spill]]  ;;  %s878_s29 = smov [#allocation8]  }
  0x10   : > { %p958_p6 = pnand %p552_p3, %p172_p4  ;;  %s186_s30 = sshll.u32 %s878_s29, 4  ;;  %s187_s30 = int_to_ptr.vmem [resolvable:$true] %s186_s30 }
  0x11   : > { %s549_s5 = sadd.s32 4294967294, %s876_s22   ;;  %s32_s6 = sadd.s32 1, %s872_s21 }
  0x12   : > { %p581_p7 = pneg %p958_p6  ;;  %p33_p10 = scmp.ge.s32.totalorder %s32_s6, 2 }
  0x13   : > { %s44_s7 = sadd.s32 1, %s864_s19  ;;  %p51_p11 = scmp.ne.s32.totalorder %s864_s19, %s860_s18 }
  0x14   : > { %p582_p9 = pnand %p581_p7, %p1112_p1  ;;  %p52_p12 = scmp.eq.s32.totalorder %s876_s22, 0 }
  0x15   : > { %s184_s28 = sshll.u32 %s1117_s2, 4  ;;  %s1133_s6 = smov (%p33_p10, %s32_s6), 0  ;;  %s185_s28 = int_to_ptr.hbm [resolvable:$true] %s184_s28 }
  0x16   : > { %584 = dma.hbm_to_vmem [thread:$0]  (!%p582_p9), %s185_s28, 128, %s187_s30, [#allocation7]  }
  0x17   : > { %1118 = sst [smem:[#allocation15_spill]] %s1133_s6  ;;  %p980_p13 = por %p52_p12, %p51_p11 }
  0x18   : > { %p57_p0 = scmp.ne.s32.totalorder %s860_s18, %s856_s17  ;;  %s40_s9 = ssub.s32 %s872_s21, %s1133_s6 }
  0x19   : > { %p990_p3 = por %p159_p2, %p51_p11  ;;  %p42_p4 = scmp.eq.s32.totalorder %s40_s9, 0 }
  0x1a   : > { %p996_p7 = por %p1112_p1, %p57_p0  ;;  %p165_p9 = scmp.eq.s32.totalorder %s549_s5, 1 }
  0x1b   : > { %p597_p10 = scmp.lt.s32.totalorder %s876_s22, 2  ;;  %s200_s14 = sand.u32 1, %s864_s19  }
  0x1c   : > { %s1002_s12 = scalar_select %p42_p4, %s864_s19, %s44_s7  }
  0x1d   : > { %p1004_p8 = por %p165_p9, %p57_p0  ;;  %s555_s15 = sshll.u32 %s200_s14, 3 }
  0x1e   : > { %s556_s26 = sshll.u32 %s872_s21, 3  ;;  %s204_s30 = scalar_lea.vmem [#allocation3], %s555_s15 }
  0x1f   : > { %s210_s29 = scalar_lea.hbm %s1105_s0, %s556_s26  ;;  %s214_s5 = sshll.u32 %s204_s30, 4  ;;  %s215_s5 = int_to_ptr.vmem [resolvable:$true] %s214_s5 }
  0x20   : > { %s212_s9 = sshll.u32 %s210_s29, 4  ;;  %p586_p2 = pnand %p597_p10, %p980_p13  ;;  %s213_s9 = int_to_ptr.hbm [resolvable:$true] %s212_s9 }
  0x21   : > { %s201_s7 = scalar_lea.sflag [#allocation4], %s200_s14  ;;  %p845_p11 = scmp.ne.s32.totalorder %s852_s16, 0 }
  0x22   : > { %588 = dma.hbm_to_vmem [thread:$0]  (!%p586_p2), %s213_s9, 128, %s215_s5, %s201_s7  }
  0x23   : > { %s221_s2 = sand.u32 1, %s876_s22   ;;  %p87_p0 = por %p845_p11, %p52_p12 }
  0x24   : > { %s236_s27 = sshll.u32 %s1106_s1, 4  ;;  %s879_s15 = smov [#allocation6]   ;;  %s237_s27 = int_to_ptr.hbm [resolvable:$true] %s236_s27 }
  0x25   : > { %s238_s26 = sshll.u32 %s879_s15, 4  ;;  %p589_p4 = pnand %p597_p10, %p87_p0  ;;  %s239_s26 = int_to_ptr.vmem [resolvable:$true] %s238_s26 }
  0x26   : > { %s222_s28 = scalar_lea.sflag [#allocation7], %s221_s2  ;;  %s735_s8 = sshra.s32 %s237_s27, 4  ;;  %s736_s8 = int_to_ptr.hbm [resolvable:$true] %s735_s8 }
  0x27   : > { %s737_s29 = scalar_lea.hbm %s736_s8, 8  ;;  %p739_p9 = pneg %p589_p4 }
  0x28   : > { %p738_p13 = scmp.ne.s32.totalorder %s736_s8, %s737_s29  ;;  %p743_p12 = scmp.lt.s32.totalorder %s736_s8, %s1106_s1 }
  0x2a   : > { %p740_p2 = pnand %p739_p9, %p738_p13 }
  0x2c   : > { %p741_p1 = pneg %p740_p2 }
  0x2e   : > { %p746_p11 = pnand %p743_p12, %p741_p1 }
  0x30   : > { %749 = shalt.err (!%p746_p11)
}
  0x31   : > { %591 = dma.hbm_to_vmem [thread:$0]  (!%p589_p4), %s237_s27, 128, %s239_s26, %s222_s28  }
  0x32   : > { %247 = sbr.rel (%p958_p6) target bundleno = 110 (0x6e), region = 36  ;;  %s1032_s2 = sand.u32 (!%p958_p6), 1, %s860_s18  }
  0x33   : > { %s561_s21 = sshll.u32 (!%p958_p6), %s1032_s2, 3  ;;  %s250_s6 = scalar_lea.sflag (!%p958_p6), [#allocation4], %s1032_s2 }
  0x34   : > { %s253_s5 = scalar_lea.vmem (!%p958_p6), [#allocation3], %s561_s21 }
  0x37   : > { %830 = dma.done.wait (%p996_p7), %s250_s6, 128  }
  0x38   : > { %832 = vsyncadd (%p996_p7), %s250_s6, 4294967168  ;;  %s259_s9 = sand.u32 1, %s945_s23   ;;  %s261_s25 = sand.u32 1, %s852_s16  }
  0x39   : > { %s562_s7 = sshll.u32 %s261_s25, 3  ;;  %s260_s27 = scalar_lea.sflag [#allocation7], %s259_s9 }
  0x3a   : > { %s263_s15 = scalar_lea.vmem [#allocation6], %s562_s7 }
  0x3b   : > { %834 = dma.done.wait (%p954_p5), %s260_s27, 128  }
  0x3c   : > { %836 = vsyncadd (%p954_p5), %s260_s27, 4294967168  ;;  %p1123_p1 = scmp.eq.s32.totalorder %s945_s23, 0 }
  0x3e   : > { %838 = dma.done.wait (%p1123_p1), [#allocation7], 128   ;;  %p1124_p6 = pmov %p1123_p1 }
  0x3f   : > { %s1050_s11 = scalar_lea.vmem [#allocation9], %s561_s21  ;;  %p565_p7 = scmp.ne.s32.totalorder %s868_s20, 0 }
  0x40   : > { %840 = vsyncadd (%p1124_p6), [#allocation7], 4294967168 }
  0x41   : > { %305 = sbr.rel (%p565_p7) target bundleno = 72 (0x48), region = 52 }
  0x46   : > { %v880_v0 = vmov 0.0  }
  0x47   : > { %306 = vst [vmem:[#allocation2] sm:$0xff] %v880_v0 }
  0x48 PF: > { %p566_p10 = scmp.le.s32.totalorder %s868_s20, 0 }
  0x4a   : > { %310 = sbr.rel (%p566_p10) target bundleno = 81 (0x51), region = 56 }
  0x4f   : > { %v311_v1 = vld [vmem:[%s263_s15] sm:$0xff] }
  0x50   : > { %312 = vst [vmem:[#allocation2] sm:$0xff] %v311_v1 }
  0x51 PF: > { %v313_v2 = vld [vmem:[%s253_s5] sm:$0xff]  ;;  %v674_v4 = vld [vmem:[%s1108_s3] ss:$0 sm:$0xff]  ;;  %vm332_vm0 = vcmask 1046528   ;;  %vm345_vm1 = vcmask 1045504   ;;  %vm358_vm2 = vcmask 1044480  }
  0x52   : > { %v315_v3 = vld [vmem:[#allocation8] sm:$0xff]  ;;  %vm371_vm3 = vcmask 1043456   ;;  %vm384_vm4 = vcmask 1042432   ;;  %s568_s23 = sshll.u32 %s868_s20, 3  ;;  %vm397_vm5 = vcmask 1041408   ;;  %s429_s14 = sshll.u32 %s1050_s11, 4  ;;  %s430_s14 = int_to_ptr.vmem [resolvable:$true] %s429_s14 }
  0x53   : > { %v322_v5 = vperm.slane %v315_v3, 0  ;;  %v327_v6 = vperm.slane %v315_v3, 1  ;;  %v340_v7 = vperm.slane %v315_v3, 2  ;;  %v353_v8 = vperm.slane %v315_v3, 3  ;;  %s427_s29 = scalar_lea.hbm %s1109_s4, %s568_s23  ;;  %s415_s20 = scalar_lea.sflag [#allocation5], %s1032_s2 }
  0x54   : > { %v366_v9 = vperm.slane %v315_v3, 4  ;;  %v379_v10 = vperm.slane %v315_v3, 5  ;;  %v392_v11 = vperm.slane %v315_v3, 6  ;;  %v405_v15 = vperm.slane %v315_v3, 7  ;;  %s431_s30 = sshll.u32 %s427_s29, 4  ;;  %s785_s25 = scalar_lea.hbm %s1109_s4, 16  ;;  %s432_s30 = int_to_ptr.hbm [resolvable:$true] %s431_s30 }
  0x55   : > { %v324_v12 = vmul.f32 %v322_v5, %v313_v2  ;;  %v329_v13 = vmul.f32 %v327_v6, %v313_v2  ;;  %v342_v14 = vmul.f32 %v340_v7, %v313_v2  ;;  %v355_v16 = vmul.f32 %v353_v8, %v313_v2  ;;  %s779_s21 = sshra.s32 %s432_s30, 4  ;;  %s780_s21 = int_to_ptr.hbm [resolvable:$true] %s779_s21 }
  0x56   : > { %v368_v17 = vmul.f32 %v366_v9, %v313_v2  ;;  %v381_v22 = vmul.f32 %v379_v10, %v313_v2  ;;  %v394_v23 = vmul.f32 %v392_v11, %v313_v2  ;;  %v406_v24 = vmul.f32 %v405_v15, %v313_v2  ;;  %s781_s6 = scalar_lea.hbm %s780_s21, 8  ;;  %p786_p13 = scmp.lt.s32.totalorder %s780_s21, %s1109_s4 }
  0x57   : > { %v320_v18 = vld [vmem:[#allocation2] sm:$0xff]  ;;  %v326_v19 = vadd.f32 %v674_v4, %v324_v12  ;;  %v334_v20 = vrot.slane %v329_v13, 1  ;;  %v347_v21 = vrot.slane %v342_v14, 2  ;;  %v360_v26 = vrot.slane %v355_v16, 3  ;;  %p782_p5 = scmp.ne.s32.totalorder %s780_s21, %s781_s6  ;;  %p787_p9 = scmp.lt.s32.totalorder %s785_s25, %s781_s6 }
  0x58   : > { %v323_v27 = vmul.f32 %v322_v5, %v320_v18  ;;  %v328_v28 = vmul.f32 %v327_v6, %v320_v18  ;;  %v373_v29 = vrot.slane %v368_v17, 4  ;;  %v341_v30 = vmul.f32 %v340_v7, %v320_v18 }
  0x59   : > { %v339_v25 = vadd.f32 %v334_v20, %v326_v19  ;;  %v354_v31 = vmul.f32 %v353_v8, %v320_v18  ;;  %v367_v32 = vmul.f32 %v366_v9, %v320_v18  ;;  %v386_v34 = vrot.slane %v381_v22, 5  ;;  %p783_p0 = pnand %p782_p5, %p990_p3  ;;  %p788_p2 = por %p787_p9, %p786_p13 }
  0x5a   : > { %v325_v35 = vadd.f32 %v674_v4, %v323_v27  ;;  %v333_v36 = vrot.slane %v328_v28, 1  ;;  %v346_v37 = vrot.slane %v341_v30, 2  ;;  %v380_v39 = vmul.f32 %v379_v10, %v320_v18 }
  0x5b   : > { %v352_v33 = vadd.f32 %v347_v21, %v339_v25  ;;  %v359_v38 = vrot.slane %v354_v31, 3  ;;  %v372_v42 = vrot.slane %v367_v32, 4  ;;  %v393_v43 = vmul.f32 %v392_v11, %v320_v18  ;;  %p784_p4 = pneg %p783_p0 }
  0x5c   : > { %v335_v41 = vsel %vm332_vm0, %v333_v36, %v334_v20  ;;  %v348_v45 = vsel %vm345_vm1, %v346_v37, %v347_v21  ;;  %v399_v47 = vrot.slane %v394_v23, 6  ;;  %v385_v49 = vrot.slane %v380_v39, 5 }
  0x5d   : > { %v365_v40 = vadd.f32 %v360_v26, %v352_v33  ;;  %v338_v44 = vadd.f32 %v335_v41, %v325_v35  ;;  %v361_v48 = vsel %vm358_vm2, %v359_v38, %v360_v26  ;;  %v408_v52 = vrot.slane %v406_v24, 7  ;;  %p789_p12 = pnand %p788_p2, %p784_p4 }
  0x5e   : > { %v374_v53 = vsel %vm371_vm3, %v372_v42, %v373_v29  ;;  %v398_v54 = vrot.slane %v393_v43, 6  ;;  %v387_v57 = vsel %vm384_vm4, %v385_v49, %v386_v34 }
  0x5f   : > { %v378_v46 = vadd.f32 %v373_v29, %v365_v40  ;;  %v351_v50 = vadd.f32 %v348_v45, %v338_v44 }
  0x60   : > { %v400_v60 = vsel %vm397_vm5, %v398_v54, %v399_v47 }
  0x61   : > { %v391_v51 = vadd.f32 %v386_v34, %v378_v46  ;;  %v364_v55 = vadd.f32 %v361_v48, %v351_v50 }
  0x63   : > { %v404_v56 = vadd.f32 %v399_v47, %v391_v51  ;;  %v377_v58 = vadd.f32 %v374_v53, %v364_v55 }
  0x65   : > { %v411_v59 = vadd.f32 %v408_v52, %v404_v56  ;;  %v390_v61 = vadd.f32 %v387_v57, %v377_v58 }
  0x67   : > { %413 = vst [vmem:[%s1050_s11 + $0x7] sm:$0x1] %v411_v59  ;;  %v403_v62 = vadd.f32 %v400_v60, %v390_v61 }
  0x69   : > { %v410_v63 = vadd.f32 %v408_v52, %v403_v62 }
  0x6b   : > { %412 = vst [vmem:[%s1050_s11 - $0x1] sm:$0xfe] %v410_v63 }
  0x6c   : > { %792 = shalt.err (!%p789_p12)
}
  0x6d   : > { %579 = dma.vmem_to_hbm [thread:$0]  (%p990_p3), %s430_s14, 128, %s432_s30, %s415_s20  }
  0x6e PF: > { %s443_s2 = sand.u32 1, %s856_s17   ;;  %p1125_p11 = scmp.ge.s32.totalorder %s876_s22, 2 }
  0x6f   : > { %s444_s15 = scalar_lea.sflag [#allocation5], %s443_s2 }
  0x70   : > { %p593_p1 = pnand %p1125_p11, %p1004_p8 }
  0x72   : > { %p594_p6 = pneg %p593_p1 }
  0x74   : > { %842 = dma.done.wait (%p594_p6), %s444_s15, 128  }
  0x75   : > { %844 = vsyncadd (%p594_p6), %s444_s15, 4294967168  ;;  %s23_s22 = sadd.s32 1, %s876_s22   ;;  %s1126_s20 = sld [smem:[#allocation14_spill]] }
  0x76   : > { %p20_p7 = scmp.ge.s32.totalorder %s23_s22, 4   ;;  %s1127_s21 = sld [smem:[#allocation15_spill]] }
  0x77   : > { %s1128_s15 = smov %s852_s16  ;;  %s1086_s16 = smov 0  }
  0x78   : > { %s1129_s17 = smov %s860_s18  ;;  %s1130_s18 = smov %s864_s19 }
  0x79   : > { %s1131_s19 = smov %s1002_s12  ;;  %22 = sbr.rel (!%p20_p7) target bundleno = 11 (0xb), region = 106 }
  0x7e   :  { %450 = vsyncpa [#allocation4], 1 }
  0x7f   :  { %452 = vsyncpa [#allocation4 + $0x1], 1 }
  0x80   :  { %453 = vsyncpa [#allocation7], 1 }
  0x81   :  { %455 = vsyncpa [#allocation7 + $0x1], 1 }
  0x82   :  { %456 = vsyncpa [#allocation5], 1 }
  0x83   :  { %458 = vsyncpa [#allocation5 + $0x1], 1 }

</bundles_post_ra>
